<compile_context>
chip_gen: v7x
topology: tpu7x:2x2x1
jax: 0.10.0
libtpu: 0.0.40
codegen_flags: <defaults>
</compile_context>

<pallas_src>
import functools

import jax
import jax.numpy as jnp
from jax.experimental import pallas as pl
from jax.experimental.pallas import tpu as pltpu

EPS = 1e-5  # nn.BatchNorm1d default eps


def _round_up(a, m):
    return ((a + m - 1) // m) * m


def _pick_tile(total, target, mult):
    """Largest multiple of `mult` that divides `total` and is <= max(target, mult).

    `total` must be a positive multiple of `mult`."""
    t = max(min(target, total), mult)
    t = (t // mult) * mult
    while total % t:
        t -= mult
    return t


def _xw_kernel(x_ref, w_ref, xw_ref):
    # Linear weight application: xw = x @ W (bias added later in the main epilogue).
    xw_ref[...] = jnp.dot(x_ref[...], w_ref[...],
                          preferred_element_type=jnp.float32).astype(xw_ref.dtype)


def _gcn_kernel(adj_ref, xw_ref, b_ref, h_ref, stats_ref, acc_ref, *, tm, tk, n_true):
    """grid = (dst row tile i ["parallel"], src tile k ["arbitrary"/reduction])."""
    # NOTE: program_id/num_programs must be read at the kernel top level (reading them
    # inside a pl.when body leaks the primitive into the cond branch -> lowering error).
    i = pl.program_id(0)
    k = pl.program_id(1)
    nk = pl.num_programs(1)
    row0 = i * tm

    @pl.when(k == 0)
    def _():
        acc_ref[...] = jnp.zeros_like(acc_ref)

    # weighted message passing (gcn_message/gcn_reduce): agg = adj @ (x @ W)
    # bf16 operands, f32 accumulation on the MXU. xw is VMEM-resident; slice this
    # src tile's rows out of it.
    xw_blk = xw_ref[pl.ds(k * tk, tk), :]
    acc_ref[...] += jnp.dot(adj_ref[...], xw_blk, preferred_element_type=jnp.float32)

    @pl.when(k == nk - 1)
    def _():
        # bias + ReLU
        h = jnp.maximum(acc_ref[...] + b_ref[...], 0.0)
        h_ref[...] = h

        # partial BatchNorm statistics; exclude padded destination rows.
        row = row0 + jax.lax.broadcasted_iota(jnp.int32, h.shape, 0)
        hv = jnp.where(row < n_true, h, 0.0)
        s = jnp.sum(hv, axis=0, keepdims=True)         # (1, F)
        sq = jnp.sum(hv * hv, axis=0, keepdims=True)   # (1, F)
        sub = jax.lax.broadcasted_iota(jnp.int32, stats_ref.shape[1:], 0)
        stats_ref[0] = (jnp.where(sub == 0, s, 0.0)
                        + jnp.where(sub == 1, sq, 0.0))


def encoder_layer(adj, x, w, b, gamma, beta, *, tm_target=512, tk_target=1024):
    """adj: [N, N] dense weighted adjacency (adj[dst, src] = edge weight),
    x: [N, in_feats], w: [in_feats, out_feats], b/gamma/beta: [1, out_feats]."""
    n = x.shape[0]
    in_feats = x.shape[1]
    out_feats = w.shape[1]
    f32 = jnp.float32
    bf16 = jnp.bfloat16

    # lane-dense feature dims; node dims padded only to (16, 128) layout alignment
    fin_p = _round_up(in_feats, 128)
    fout_p = _round_up(out_feats, 128)
    n_dst = _round_up(n, 16)        # bf16 sublane packing of adj rows
    n_src = _round_up(n, 128)       # lane dim of adj / sublane dim of xw

    # >= 2 destination row tiles whenever possible so the "parallel" axis actually
    # splits across v7x's two TensorCores (harmless on single-TC v5e/v6e).
    half = _round_up(-(-n // 2), 16)
    tm = _pick_tile(n_dst, min(tm_target, half), 16)
    tk = _pick_tile(n_src, tk_target, 128)
    n_row_tiles = n_dst // tm
    n_k_tiles = n_src // tk

    # pad + cast. bf16 halves the bytes of the dominant adj copy/stream; f32
    # accumulation inside the kernels keeps the reduction accurate.
    adj_p = jnp.zeros((n_dst, n_src), bf16).at[:n, :n].set(adj.astype(bf16))
    x_p = jnp.zeros((n_src, fin_p), f32).at[:n, :in_feats].set(x.astype(f32))
    w_p = jnp.zeros((fin_p, fout_p), f32).at[:in_feats, :out_feats].set(w.astype(f32))
    b_p = jnp.zeros((1, fout_p), f32).at[:, :out_feats].set(b.astype(f32))

    # ---- pass 0: xw = x @ W (Linear weight), output bf16 for the big contraction ----
    xw = pl.pallas_call(
        _xw_kernel,
        out_shape=jax.ShapeDtypeStruct((n_src, fout_p), bf16),
        grid=(n_k_tiles,),
        in_specs=[
            pl.BlockSpec((tk, fin_p), lambda i: (i, 0)),
            pl.BlockSpec((fin_p, fout_p), lambda i: (0, 0)),
        ],
        out_specs=pl.BlockSpec((tk, fout_p), lambda i: (i, 0)),
        compiler_params=pltpu.CompilerParams(
            dimension_semantics=("parallel",)),
    )(x_p, w_p)

    # ---- pass 1: stream adj, accumulate adj @ xw, fuse bias+ReLU+BN partial stats ----
    cost = pl.CostEstimate(
        flops=2 * n_dst * n_src * fout_p,
        transcendentals=0,
        bytes_accessed=(2 * n_dst * n_src          # adj stream (bf16)
                        + 2 * n_src * fout_p        # resident xw (bf16, loaded once)
                        + 4 * n_dst * fout_p        # h writeback
                        + 4 * n_row_tiles * 8 * fout_p  # stats writeback
                        + 4 * fout_p),              # bias
    )

    h_p, stats = pl.pallas_call(
        functools.partial(_gcn_kernel, tm=tm, tk=tk, n_true=n),
        out_shape=(
            jax.ShapeDtypeStruct((n_dst, fout_p), f32),
            jax.ShapeDtypeStruct((n_row_tiles, 8, fout_p), f32),
        ),
        grid_spec=pltpu.PrefetchScalarGridSpec(
            num_scalar_prefetch=0,
            grid=(n_row_tiles, n_k_tiles),
            in_specs=[
                pl.BlockSpec((tm, tk), lambda i, k: (i, k)),          # adj stream
                pl.BlockSpec((n_src, fout_p), lambda i, k: (0, 0)),   # xw resident
                pl.BlockSpec((1, fout_p), lambda i, k: (0, 0)),       # bias
            ],
            out_specs=[
                pl.BlockSpec((tm, fout_p), lambda i, k: (i, 0)),      # h
                pl.BlockSpec((1, 8, fout_p), lambda i, k: (i, 0, 0)),  # partial stats
            ],
            scratch_shapes=[pltpu.VMEM((tm, fout_p), f32)],
        ),
        compiler_params=pltpu.CompilerParams(
            dimension_semantics=("parallel", "arbitrary"),
            vmem_limit_bytes=56 * 1024 * 1024,   # within v7x's 64 MiB/TC
        ),
        cost_estimate=cost,
    )(adj_p, xw, b_p)

    # ---- BN finalize + folded affine apply, fused with the un-pad slice (XLA glue) ----
    # TODO(synk): if tolerance ever tightens, switch to a Welford-style merge instead of
    # E[x^2] - mean^2 (post-ReLU activations make the subtraction mildly ill-conditioned).
    tot = jnp.sum(stats, axis=0)                      # (8, F): row0 = sum, row1 = sumsq
    cnt = jnp.asarray(n, f32)
    mean = (tot[0] / cnt)[:out_feats]                 # (out_feats,)
    var = jnp.maximum(tot[1] / cnt - (tot[0] / cnt) ** 2, 0.0)[:out_feats]
    scale = gamma.astype(f32) * jax.lax.rsqrt(var + EPS)   # (1, out_feats)
    shift = beta.astype(f32) - mean * scale
    out = h_p[:n, :out_feats] * scale + shift

    # TODO(synk): training-mode dropout (Bernoulli mask + 1/(1-p) scale) not emitted;
    # eval-mode dropout is the identity.
    return out


def reference(adj, x, w, b, gamma, beta):
    agg = adj @ x
    h = agg @ w + b
    h = jnp.maximum(h, 0.0)
    mean = h.mean(axis=0, keepdims=True)
    var = ((h - mean) ** 2).mean(axis=0, keepdims=True)
    return (h - mean) / jnp.sqrt(var + EPS) * gamma + beta


if __name__ == "__main__":
    N = 32          # number of graph nodes
    in_feats = 16
    out_feats = 32

    key = jax.random.PRNGKey(0)
    k_x, k_mask, k_wgt, k_w, k_b = jax.random.split(key, 5)

    # node features
    x = jax.random.normal(k_x, (N, in_feats), dtype=jnp.float32)

    # random weighted graph: adj[dst, src] = weight (plus self-loops)
    mask = (jax.random.uniform(k_mask, (N, N)) < 0.3).astype(jnp.float32)
    mask = jnp.maximum(mask, jnp.eye(N, dtype=jnp.float32))
    weights = jax.random.uniform(k_wgt, (N, N), dtype=jnp.float32)
    adj = mask * weights

    # nn.Linear(in_feats, out_feats) params (PyTorch weight is [out, in]; pre-transposed)
    bound = 1.0 / (in_feats ** 0.5)
    w_pt = jax.random.uniform(k_w, (out_feats, in_feats), minval=-bound, maxval=bound,
                              dtype=jnp.float32)
    b = jax.random.uniform(k_b, (1, out_feats), minval=-bound, maxval=bound,
                           dtype=jnp.float32)
    w = w_pt.T

    # nn.BatchNorm1d affine params (default init)
    gamma = jnp.ones((1, out_feats), dtype=jnp.float32)
    beta = jnp.zeros((1, out_feats), dtype=jnp.float32)

    out = jax.jit(encoder_layer)(adj, x, w, b, gamma, beta)
    out = jax.block_until_ready(out)

    ref = reference(adj, x, w, b, gamma, beta)
    assert out.shape == (N, out_feats)
    # streamed MXU operands are bf16 (f32 accumulation), so compare against the full-f32
    # reference with a mixed-precision tolerance.
    assert jnp.allclose(out, ref, atol=5e-2, rtol=5e-2)

    print("KERNEL_OK")
</pallas_src>

<mosaic_0001>
module attributes {stable_mosaic.version = 11 : i64} {
  func.func @_gcn_kernel(%arg0: i32, %arg1: i32, %arg2: memref<16x128xbf16, #tpu.memory_space<vmem>>, %arg3: memref<128x128xbf16, #tpu.memory_space<vmem>>, %arg4: memref<1x128xf32, #tpu.memory_space<vmem>>, %arg5: memref<16x128xf32, #tpu.memory_space<vmem>>, %arg6: memref<1x8x128xf32, #tpu.memory_space<vmem>>, %arg7: memref<16x128xf32, #tpu.memory_space<vmem>>) attributes {dimension_semantics = [#tpu.dimension_semantics<parallel>, #tpu.dimension_semantics<arbitrary>], iteration_bounds = array<i64: 2, 1>, scalar_prefetch = 0 : i64, scratch_operands = 1 : i64, tpu.core_type = #tpu.core_type<tc>, window_params = [{transform_indices = @transform_0, window_bounds = array<i64: 16, 128>}, {pipeline_mode = #tpu.pipeline_mode<synchronous>, transform_indices = @transform_1, window_bounds = array<i64: 128, 128>}, {pipeline_mode = #tpu.pipeline_mode<synchronous>, transform_indices = @transform_2, window_bounds = array<i64: 1, 128>}, {transform_indices = @transform_3, window_bounds = array<i64: 16, 128>}, {transform_indices = @transform_4, window_bounds = array<i64: 1, 8, 128>}]} {
    %c16_i32 = arith.constant 16 : i32
    %0 = arith.muli %arg0, %c16_i32 : i32
    %c0_i32 = arith.constant 0 : i32
    %1 = arith.cmpi eq, %arg1, %c0_i32 : i32
    %2 = arith.extui %1 : i1 to i32
    %c0_i32_0 = arith.constant 0 : i32
    %3 = arith.cmpi ne, %2, %c0_i32_0 : i32
    scf.if %3 {
      %cst_9 = arith.constant 0.000000e+00 : f32
      %15 = vector.broadcast %cst_9 : f32 to vector<16x128xf32>
      %c0_10 = arith.constant 0 : index
      %c0_11 = arith.constant 0 : index
      %16 = vector.load %arg7[%c0_10, %c0_11] : memref<16x128xf32, #tpu.memory_space<vmem>>, vector<16x128xf32>
      tpu.vector_store %arg7[%c0_10, %c0_11], %15 {strides = array<i32>} : memref<16x128xf32, #tpu.memory_space<vmem>>, vector<16x128xf32>,
    } else {
    }
    %c128_i32 = arith.constant 128 : i32
    %4 = arith.muli %arg1, %c128_i32 : i32
    %5 = arith.index_cast %4 : i32 to index
    %c0 = arith.constant 0 : index
    %6 = vector.load %arg3[%5, %c0] : memref<128x128xbf16, #tpu.memory_space<vmem>>, vector<128x128xbf16>
    %c0_1 = arith.constant 0 : index
    %c0_2 = arith.constant 0 : index
    %7 = vector.load %arg7[%c0_1, %c0_2] : memref<16x128xf32, #tpu.memory_space<vmem>>, vector<16x128xf32>
    %c0_3 = arith.constant 0 : index
    %c0_4 = arith.constant 0 : index
    %8 = vector.load %arg2[%c0_3, %c0_4] : memref<16x128xbf16, #tpu.memory_space<vmem>>, vector<16x128xbf16>
    %cst = arith.constant dense<0.000000e+00> : vector<16x128xf32>
    %9 = tpu.matmul %8, %6, %cst {dimension_numbers = #tpu.dot_dimension_numbers<[1], [0], [0], [1], [0, 0, 1, 1], [], []>} : vector<16x128xbf16>, vector<128x128xbf16>, vector<16x128xf32> -> vector<16x128xf32>
    %10 = arith.addf %7, %9 : vector<16x128xf32>
    %c0_5 = arith.constant 0 : index
    %c0_6 = arith.constant 0 : index
    %11 = vector.load %arg7[%c0_5, %c0_6] : memref<16x128xf32, #tpu.memory_space<vmem>>, vector<16x128xf32>
    tpu.vector_store %arg7[%c0_5, %c0_6], %10 {strides = array<i32>} : memref<16x128xf32, #tpu.memory_space<vmem>>, vector<16x128xf32>,
    %c0_i32_7 = arith.constant 0 : i32
    %12 = arith.cmpi eq, %arg1, %c0_i32_7 : i32
    %13 = arith.extui %12 : i1 to i32
    %c0_i32_8 = arith.constant 0 : i32
    %14 = arith.cmpi ne, %13, %c0_i32_8 : i32
    scf.if %14 {
      %c0_9 = arith.constant 0 : index
      %c0_10 = arith.constant 0 : index
      %15 = vector.load %arg7[%c0_9, %c0_10] : memref<16x128xf32, #tpu.memory_space<vmem>>, vector<16x128xf32>
      %c0_11 = arith.constant 0 : index
      %c0_12 = arith.constant 0 : index
      %16 = vector.load %arg4[%c0_11, %c0_12] : memref<1x128xf32, #tpu.memory_space<vmem>>, vector<1x128xf32>
      %17 = vector.broadcast %16 : vector<1x128xf32> to vector<16x128xf32>
      %18 = arith.addf %15, %17 : vector<16x128xf32>
      %cst_13 = arith.constant 0.000000e+00 : f32
      %19 = vector.broadcast %cst_13 : f32 to vector<16x128xf32>
      %20 = arith.maximumf %18, %19 : vector<16x128xf32>
      %c0_14 = arith.constant 0 : index
      %c0_15 = arith.constant 0 : index
      %21 = vector.load %arg5[%c0_14, %c0_15] : memref<16x128xf32, #tpu.memory_space<vmem>>, vector<16x128xf32>
      tpu.vector_store %arg5[%c0_14, %c0_15], %20 {strides = array<i32>} : memref<16x128xf32, #tpu.memory_space<vmem>>, vector<16x128xf32>,
      %22 = tpu.iota {dimensions = array<i32: 0>} : vector<16x128xi32>
      %23 = vector.broadcast %0 : i32 to vector<16x128xi32>
      %24 = arith.addi %23, %22 : vector<16x128xi32>
      %c32_i32 = arith.constant 32 : i32
      %25 = vector.broadcast %c32_i32 : i32 to vector<16x128xi32>
      %26 = arith.cmpi slt, %24, %25 : vector<16x128xi32>
      %cst_16 = arith.constant 0.000000e+00 : f32
      %27 = vector.broadcast %cst_16 : f32 to vector<16x128xf32>
      %28 = arith.select %26, %20, %27 : vector<16x128xi1>, vector<16x128xf32>
      %cst_17 = arith.constant dense<0.000000e+00> : vector<128xf32>
      %29 = vector.multi_reduction <add>, %28, %cst_17 [0] : vector<16x128xf32> to vector<128xf32>
      %30 = vector.shape_cast %29 : vector<128xf32> to vector<1x128xf32>
      %31 = arith.mulf %28, %28 : vector<16x128xf32>
      %cst_18 = arith.constant dense<0.000000e+00> : vector<128xf32>
      %32 = vector.multi_reduction <add>, %31, %cst_18 [0] : vector<16x128xf32> to vector<128xf32>
      %33 = vector.shape_cast %32 : vector<128xf32> to vector<1x128xf32>
      %34 = tpu.iota {dimensions = array<i32: 0>} : vector<8x128xi32>
      %c0_i32_19 = arith.constant 0 : i32
      %35 = vector.broadcast %c0_i32_19 : i32 to vector<8x128xi32>
      %36 = arith.cmpi eq, %34, %35 : vector<8x128xi32>
      %cst_20 = arith.constant 0.000000e+00 : f32
      %37 = vector.shape_cast %30 : vector<1x128xf32> to vector<1x128xf32>
      %38 = vector.broadcast %37 : vector<1x128xf32> to vector<8x128xf32>
      %39 = vector.broadcast %cst_20 : f32 to vector<8x128xf32>
      %40 = arith.select %36, %38, %39 : vector<8x128xi1>, vector<8x128xf32>
      %c1_i32 = arith.constant 1 : i32
      %41 = vector.broadcast %c1_i32 : i32 to vector<8x128xi32>
      %42 = arith.cmpi eq, %34, %41 : vector<8x128xi32>
      %cst_21 = arith.constant 0.000000e+00 : f32
      %43 = vector.shape_cast %33 : vector<1x128xf32> to vector<1x128xf32>
      %44 = vector.broadcast %43 : vector<1x128xf32> to vector<8x128xf32>
      %45 = vector.broadcast %cst_21 : f32 to vector<8x128xf32>
      %46 = arith.select %42, %44, %45 : vector<8x128xi1>, vector<8x128xf32>
      %47 = arith.addf %40, %46 : vector<8x128xf32>
      %c0_22 = arith.constant 0 : index
      %c0_23 = arith.constant 0 : index
      %c0_24 = arith.constant 0 : index
      %48 = vector.load %arg6[%c0_22, %c0_23, %c0_24] : memref<1x8x128xf32, #tpu.memory_space<vmem>>, vector<1x8x128xf32>
      %49 = vector.shape_cast %48 : vector<1x8x128xf32> to vector<8x128xf32>
      %50 = vector.shape_cast %47 : vector<8x128xf32> to vector<1x8x128xf32>
      tpu.vector_store %arg6[%c0_22, %c0_23, %c0_24], %50 {strides = array<i32>} : memref<1x8x128xf32, #tpu.memory_space<vmem>>, vector<1x8x128xf32>,
    } else {
    }
    return
  }
  func.func @transform_0(%arg0: i32, %arg1: i32) -> (i32, i32) {
    %c0_i32 = arith.constant 0 : i32
    return %arg0, %arg1 : i32, i32
  }
  func.func @transform_1(%arg0: i32, %arg1: i32) -> (i32, i32) {
    %c0_i32 = arith.constant 0 : i32
    %c0_i32_0 = arith.constant 0 : i32
    %c0_i32_1 = arith.constant 0 : i32
    return %c0_i32, %c0_i32_0 : i32, i32
  }
  func.func @transform_2(%arg0: i32, %arg1: i32) -> (i32, i32) {
    %c0_i32 = arith.constant 0 : i32
    %c0_i32_0 = arith.constant 0 : i32
    %c0_i32_1 = arith.constant 0 : i32
    return %c0_i32, %c0_i32_0 : i32, i32
  }
  func.func @transform_3(%arg0: i32, %arg1: i32) -> (i32, i32) {
    %c0_i32 = arith.constant 0 : i32
    %c0_i32_0 = arith.constant 0 : i32
    return %arg0, %c0_i32 : i32, i32
  }
  func.func @transform_4(%arg0: i32, %arg1: i32) -> (i32, i32, i32) {
    %c0_i32 = arith.constant 0 : i32
    %c0_i32_0 = arith.constant 0 : i32
    %c0_i32_1 = arith.constant 0 : i32
    return %arg0, %c0_i32, %c0_i32_0 : i32, i32, i32
  }
}

module attributes {stable_mosaic.version = 11 : i64} {
  func.func @_xw_kernel(%arg0: i32, %arg1: memref<128x128xf32, #tpu.memory_space<vmem>>, %arg2: memref<128x128xf32, #tpu.memory_space<vmem>>, %arg3: memref<128x128xbf16, #tpu.memory_space<vmem>>) attributes {dimension_semantics = [#tpu.dimension_semantics<parallel>], iteration_bounds = array<i64: 1>, scalar_prefetch = 0 : i64, scratch_operands = 0 : i64, tpu.core_type = #tpu.core_type<tc>, window_params = [{transform_indices = @transform_0, window_bounds = array<i64: 128, 128>}, {pipeline_mode = #tpu.pipeline_mode<synchronous>, transform_indices = @transform_1, window_bounds = array<i64: 128, 128>}, {transform_indices = @transform_2, window_bounds = array<i64: 128, 128>}]} {
    %c0 = arith.constant 0 : index
    %c0_0 = arith.constant 0 : index
    %0 = vector.load %arg1[%c0, %c0_0] : memref<128x128xf32, #tpu.memory_space<vmem>>, vector<128x128xf32>
    %c0_1 = arith.constant 0 : index
    %c0_2 = arith.constant 0 : index
    %1 = vector.load %arg2[%c0_1, %c0_2] : memref<128x128xf32, #tpu.memory_space<vmem>>, vector<128x128xf32>
    %cst = arith.constant dense<0.000000e+00> : vector<128x128xf32>
    %2 = tpu.matmul %0, %1, %cst {dimension_numbers = #tpu.dot_dimension_numbers<[1], [0], [0], [1], [0, 0, 1, 1], [], []>} : vector<128x128xf32>, vector<128x128xf32>, vector<128x128xf32> -> vector<128x128xf32>
    %3 = arith.truncf %2 : vector<128x128xf32> to vector<128x128xbf16>
    %c0_3 = arith.constant 0 : index
    %c0_4 = arith.constant 0 : index
    %4 = vector.load %arg3[%c0_3, %c0_4] : memref<128x128xbf16, #tpu.memory_space<vmem>>, vector<128x128xbf16>
    tpu.vector_store %arg3[%c0_3, %c0_4], %3 {strides = array<i32>} : memref<128x128xbf16, #tpu.memory_space<vmem>>, vector<128x128xbf16>,
    return
  }
  func.func @transform_0(%arg0: i32) -> (i32, i32) {
    %c0_i32 = arith.constant 0 : i32
    %c0_i32_0 = arith.constant 0 : i32
    return %arg0, %c0_i32 : i32, i32
  }
  func.func @transform_1(%arg0: i32) -> (i32, i32) {
    %c0_i32 = arith.constant 0 : i32
    %c0_i32_0 = arith.constant 0 : i32
    %c0_i32_1 = arith.constant 0 : i32
    return %c0_i32, %c0_i32_0 : i32, i32
  }
  func.func @transform_2(%arg0: i32) -> (i32, i32) {
    %c0_i32 = arith.constant 0 : i32
    %c0_i32_0 = arith.constant 0 : i32
    return %arg0, %c0_i32 : i32, i32
  }
}

</mosaic_0001>

<bundles_post_ra>
// kernel: encoder_layer.3
= control target key start
LH: loop header
LB: loop body
LE: loop exit
PB: predicated region body
PF: predicated region fallthrough
CT: control target
= control target key end

     0   :  { %s656_s15 = smov 0   ;;  %s658_s16 = smov 0   ;;  %s729_s0 = inlined_call_operand.vmem [shape: bf16[32,128], index: 0, kind: input, shape index: {}]   ;;  %s730_s1 = inlined_call_operand.vmem [shape: bf16[128,128], index: 1, kind: input, shape index: {}]   ;;  %s731_s2 = inlined_call_operand.vmem [shape: f32[1,128], index: 2, kind: input, shape index: {}]   ;;  %s732_s3 = inlined_call_operand.vmem [shape: f32[32,128], index: 3, kind: output, shape index: {0}]   ;;  %s733_s4 = inlined_call_operand.vmem [shape: f32[2,8,128], index: 4, kind: output, shape index: {1}]  }
   0x1   :  { %s660_s17 = smov 0  }
   0x2 LB: > { %s27_s18 = sadd.s32 1, %s623_s16  ;;  %p522_p0 = scmp.ge.s32.totalorder %s627_s17, 1  ;;  %s627_s17 = sphi %s660_s17, %s15_s17   ;;  %s623_s16 = sphi %s658_s16, %s735_s16   ;;  %s619_s15 = sphi %s656_s15, %s734_s15  }
   0x3   : > { %p29_p1 = scmp.ge.s32.totalorder %s27_s18, 2  ;;  %p183_p2 = scmp.lt.s32.totalorder %s627_s17, 3 }
   0x5   : > { %s737_s18 = smov (%p29_p1, %s27_s18), 0  ;;  %p184_p3 = pnand %p522_p0, %p183_p2 }
   0x6   : > { %v596_v0 = vld [vmem:[%s730_s1] sm:$0xff] (!%p184_p3)   ;;  %v629_v1 = vmov (!%p184_p3), 0.0   ;;  %v597_v2 = vld [vmem:[%s730_s1 + $0x8] sm:$0xff] (!%p184_p3)   ;;  %vm630_vm0 = vmmov (!%p184_p3), 0   ;;  %s523_s23 = sshll.u32 (!%p184_p3), %s619_s15, 1  ;;  %v598_v3 = vld [vmem:[%s730_s1 + $0x10] sm:$0xff] (!%p184_p3)   ;;  %v385_v10 = vlaneseq (!%p184_p3) }
   0x7   : > { %187 = sbr.rel (%p184_p3) target bundleno = 278 (0x116), region = 32  ;;  %550 = vmatprep.subr.bf16.mxu0 (!%p184_p3), %v629_v1  ;;  %566 = vmatprep.mubr.msk.bf16.mxu0 (!%p184_p3), %vm630_vm0, %v629_v1  ;;  %p217_p4 = scmp.lt.s32.totalorder (!%p184_p3), %s523_s23, 3  ;;  %v599_v4 = vld [vmem:[%s730_s1 + $0x18] sm:$0xff] (!%p184_p3)   ;;  %v600_v5 = vld [vmem:[%s730_s1 + $0x20] sm:$0xff] (!%p184_p3)   ;;  %v601_v6 = vld [vmem:[%s730_s1 + $0x28] sm:$0xff] (!%p184_p3)  }
   0x8   : > { %551 = vmatpush3.bf16.msra.mxu0 (!%p184_p3), %v596_v0  ;;  %v602_v7 = vld [vmem:[%s730_s1 + $0x30] sm:$0xff] (!%p184_p3)   ;;  %v603_v8 = vld [vmem:[%s730_s1 + $0x38] sm:$0xff] (!%p184_p3)   ;;  %s528_s14 = sshll.u32 (!%p184_p3), %s619_s15, 4  ;;  %v386_v11 = vshrl.u32 (!%p184_p3), %v385_v10, 7  ;;  %v538_v14 = vld [vmem:[%s731_s2] ss:$0 sm:$0xff] (!%p184_p3) }
   0x9   : > { %552 = vmatprep.subr.bf16.mxu0 (!%p184_p3), %v629_v1  ;;  %v388_v12 = vstv (!%p184_p3), %s528_s14  ;;  %p231_p5 = scmp.lt.s32.totalorder (!%p184_p3), %s619_s15, 1 }
   0xa   : > { %v387_v13 = vadd.s32 (!%p184_p3), 8, %v386_v11  ;;  %v389_v15 = vadd.s32 (!%p184_p3), %v388_v12, %v386_v11  ;;  %vm411_vm3 = vcmp.eq.s32.totalorder (!%p184_p3), %v386_v11, 0  ;;  %vm413_vm4 = vcmp.eq.s32.totalorder (!%p184_p3), %v386_v11, 1 }
   0xc   : > { %553 = vmatpush3.bf16.msra.mxu0 (!%p184_p3), %v597_v2  ;;  %v390_v17 = vadd.s32 (!%p184_p3), %v388_v12, %v387_v13  ;;  %vm391_vm1 = vcmp.lt.s32.totalorder (!%p184_p3), %v389_v15, 32 }
   0xd   : > { %554 = vmatprep.subr.bf16.mxu0 (!%p184_p3), %v629_v1 }
   0xe   : > { %s739_s23 = smov (!%p217_p4, %s523_s23), 3  ;;  %vm392_vm2 = vcmp.lt.s32.totalorder %v390_v17, 32  ;;  %s741_s15 = smov (!%p231_p5, %s619_s15), 1 }
   0xf   : > { %s524_s26 = sshll.u32 %s739_s23, 2  ;;  %s526_s21 = sshll.u32 %s739_s23, 3 }
  0x10   : > { %s223_s29 = scalar_lea.vmem %s729_s0, %s524_s26  ;;  %555 = vmatpush3.bf16.msra.mxu0 %v598_v3  ;;  %s229_s25 = scalar_lea.vmem %s732_s3, %s526_s21 }
  0x11   : > { %556 = vmatprep.subr.bf16.mxu0 %v629_v1  ;;  %v604_v9 = vld [vmem:[%s223_s29] sm:$0xff]   ;;  %s527_s23 = sshll.u32 %s741_s15, 3 }
  0x12   : > { %s234_s28 = scalar_lea.vmem %s733_s4, %s527_s23 }
  0x14   : > { %557 = vmatpush3.bf16.msra.mxu0 %v599_v4 }
  0x15   : > { %558 = vmatprep.subr.bf16.mxu0 %v629_v1 }
  0x18   : > { %559 = vmatpush3.bf16.msra.mxu0 %v600_v5 }
  0x19   : > { %560 = vmatprep.subr.bf16.mxu0 %v629_v1 }
  0x1c   : > { %561 = vmatpush3.bf16.msra.mxu0 %v601_v6 }
  0x1d   : > { %562 = vmatprep.subr.bf16.mxu0 %v629_v1 }
  0x20   : > { %563 = vmatpush3.bf16.msra.mxu0 %v602_v7 }
  0x21   : > { %564 = vmatprep.subr.bf16.mxu0 %v629_v1 }
  0x24   : > { %565 = vmatpush3.bf16.msra.mxu0 %v603_v8 }
  0x27   : > { %567 = vmatmul.mubr.bf16.vlgmr.msra.gmra.mrb[0].mxu0 %v604_v9 }
  0xfa   : > { %v356_v16 = vpop.f32.mrb[0].mxu0 }
  0xfb   : > { %v379_v18 = vadd.f32 %v538_v14, %v356_v16  ;;  %v568_v19 = vpop.f32.mrb[1].mxu0 }
  0xfc   : > { %v359_v20 = vpop.f32.mrb[2].mxu0 }
  0xfd   : > { %v381_v21 = vmax.f32 %v379_v18, 0.0  ;;  %v380_v22 = vadd.f32 %v538_v14, %v359_v20  ;;  %v569_v23 = vpop.f32.mrb[3].mxu0 }
  0xff   : > { %383 = vst [vmem:[%s229_s25] sm:$0xff] %v381_v21  ;;  %v393_v24 = vsel %vm391_vm1, %v381_v21, 0.0  ;;  %v382_v25 = vmax.f32 %v380_v22, 0.0 }
 0x100   : > { %v402_v27 = vmul.f32 %v393_v24, %v393_v24 }
 0x101   : > { %384 = vst [vmem:[%s229_s25 + $0x8] sm:$0xff] %v382_v25  ;;  %v394_v26 = vsel %vm392_vm2, %v382_v25, 0.0 }
 0x102   : > { %v395_v28 = vadd.f32 %v394_v26, %v393_v24  ;;  %v403_v29 = vmul.f32 %v394_v26, %v394_v26 }
 0x104   : > { %v396_v30 = vrot.slane %v395_v28, 4  ;;  %v404_v31 = vadd.f32 %v403_v29, %v402_v27 }
 0x106   : > { %v397_v32 = vadd.f32 %v396_v30, %v395_v28  ;;  %v405_v33 = vrot.slane %v404_v31, 4 }
 0x108   : > { %v398_v34 = vrot.slane %v397_v32, 2  ;;  %v406_v35 = vadd.f32 %v405_v33, %v404_v31 }
 0x10a   : > { %v399_v36 = vadd.f32 %v398_v34, %v397_v32  ;;  %v407_v37 = vrot.slane %v406_v35, 2 }
 0x10c   : > { %v400_v38 = vrot.slane %v399_v36, 1  ;;  %v408_v39 = vadd.f32 %v407_v37, %v406_v35 }
 0x10e   : > { %v401_v40 = vadd.f32 %v400_v38, %v399_v36  ;;  %v409_v41 = vrot.slane %v408_v39, 1 }
 0x110   : > { %v410_v42 = vadd.f32 %v409_v41, %v408_v39  ;;  %v412_v43 = vsel %vm411_vm3, %v401_v40, 0.0 }
 0x112   : > { %v414_v44 = vsel %vm413_vm4, %v410_v42, 0.0 }
 0x113   : > { %v415_v45 = vadd.f32 %v414_v44, %v412_v43 }
 0x115   : > { %416 = vst [vmem:[%s234_s28] sm:$0xff] %v415_v45 }
 0x116 PF: > { %s15_s17 = sadd.s32 1, %s627_s17   ;;  %s734_s15 = smov %s623_s16 }
 0x117   : > { %p12_p6 = scmp.ge.s32.totalorder %s15_s17, 4   ;;  %s735_s16 = smov %s737_s18 }
 0x119   :  { %14 = sbr.rel (!%p12_p6) target bundleno = 2 (0x2), region = 83 }

// kernel: encoder_layer.2
= control target key start
LH: loop header
LB: loop body
LE: loop exit
PB: predicated region body
PF: predicated region fallthrough
CT: control target
= control target key end

     0   :  { %s622_s1 = inlined_call_operand.vmem [shape: f32[128,128], index: 1, kind: input, shape index: {}]   ;;  %s623_s0 = inlined_call_operand.vmem [shape: f32[128,128], index: 0, kind: input, shape index: {}]   ;;  %s624_s2 = inlined_call_operand.vmem [shape: bf16[128,128], index: 2, kind: output, shape index: {}]  }
   0x1   :  { %v27_v0 = vld [vmem:[%s622_s1] sm:$0xff]  ;;  %v28_v1 = vld [vmem:[%s622_s1 + $0x8] sm:$0xff]  ;;  %v29_v2 = vld [vmem:[%s622_s1 + $0x10] sm:$0xff] }
   0x2   :  { %v439_v3 = vpack.c.bf16 %v28_v1, %v27_v0  ;;  %v30_v4 = vld [vmem:[%s622_s1 + $0x18] sm:$0xff]  ;;  %v31_v6 = vld [vmem:[%s622_s1 + $0x20] sm:$0xff]  ;;  %v32_v7 = vld [vmem:[%s622_s1 + $0x28] sm:$0xff] }
   0x3   :  { %v443_v5 = vpack.c.bf16 %v30_v4, %v29_v2  ;;  %v447_v8 = vpack.c.bf16 %v32_v7, %v31_v6  ;;  %v11_v9 = vld [vmem:[%s623_s0] sm:$0xff]  ;;  %v33_v11 = vld [vmem:[%s622_s1 + $0x30] sm:$0xff]  ;;  %v34_v12 = vld [vmem:[%s622_s1 + $0x38] sm:$0xff] }
   0x4   :  { %440 = vmatprep.subr.bf16.mxu0 %v439_v3  ;;  %471 = vmatprep.subr.bf16.mxu1 %v439_v3  ;;  %v19_v10 = vld [vmem:[%s623_s0 + $0x40] sm:$0xff]  ;;  %v451_v13 = vpack.c.bf16 %v34_v12, %v33_v11  ;;  %v36_v15 = vld [vmem:[%s622_s1 + $0x48] sm:$0xff]  ;;  %v37_v17 = vld [vmem:[%s622_s1 + $0x50] sm:$0xff] }
   0x5   :  { %442 = vmatpush3.bf16.msra.mxu0 %v439_v3  ;;  %479 = vmatpush3.bf16.msra.mxu1 %v439_v3  ;;  %v35_v14 = vld [vmem:[%s622_s1 + $0x40] sm:$0xff]  ;;  %v38_v18 = vld [vmem:[%s622_s1 + $0x58] sm:$0xff]  ;;  %v40_v21 = vld [vmem:[%s622_s1 + $0x68] sm:$0xff] }
   0x6   :  { %444 = vmatprep.subr.bf16.mxu0 %v443_v5  ;;  %472 = vmatprep.subr.bf16.mxu1 %v443_v5  ;;  %v455_v16 = vpack.c.bf16 %v36_v15, %v35_v14  ;;  %v459_v19 = vpack.c.bf16 %v38_v18, %v37_v17  ;;  %v39_v20 = vld [vmem:[%s622_s1 + $0x60] sm:$0xff]  ;;  %v41_v23 = vld [vmem:[%s622_s1 + $0x70] sm:$0xff]  ;;  %v42_v24 = vld [vmem:[%s622_s1 + $0x78] sm:$0xff] }
   0x7   :  { %415 = vmatprep.mubr.f32.mxu0 %v11_v9  ;;  %427 = vmatprep.mubr.f32.mxu1 %v19_v10  ;;  %v463_v22 = vpack.c.bf16 %v40_v21, %v39_v20  ;;  %v467_v25 = vpack.c.bf16 %v42_v24, %v41_v23  ;;  %v12_v26 = vld [vmem:[%s623_s0 + $0x8] sm:$0xff]  ;;  %v13_v28 = vld [vmem:[%s623_s0 + $0x10] sm:$0xff]  ;;  %v14_v30 = vld [vmem:[%s623_s0 + $0x18] sm:$0xff] }
   0x8   :  { %v20_v27 = vld [vmem:[%s623_s0 + $0x48] sm:$0xff]  ;;  %v21_v29 = vld [vmem:[%s623_s0 + $0x50] sm:$0xff]  ;;  %v22_v31 = vld [vmem:[%s623_s0 + $0x58] sm:$0xff] }
   0x9   :  { %446 = vmatpush3.bf16.msra.mxu0 %v443_v5  ;;  %480 = vmatpush3.bf16.msra.mxu1 %v443_v5  ;;  %v15_v32 = vld [vmem:[%s623_s0 + $0x20] sm:$0xff]  ;;  %v16_v34 = vld [vmem:[%s623_s0 + $0x28] sm:$0xff]  ;;  %v17_v36 = vld [vmem:[%s623_s0 + $0x30] sm:$0xff] }
   0xa   :  { %448 = vmatprep.subr.bf16.mxu0 %v447_v8  ;;  %473 = vmatprep.subr.bf16.mxu1 %v447_v8  ;;  %v23_v33 = vld [vmem:[%s623_s0 + $0x60] sm:$0xff]  ;;  %v24_v35 = vld [vmem:[%s623_s0 + $0x68] sm:$0xff]  ;;  %v25_v37 = vld [vmem:[%s623_s0 + $0x70] sm:$0xff] }
   0xb   :  { %v18_v38 = vld [vmem:[%s623_s0 + $0x38] sm:$0xff] }
   0xc   :  { %v26_v39 = vld [vmem:[%s623_s0 + $0x78] sm:$0xff] }
   0xd   :  { %450 = vmatpush3.bf16.msra.mxu0 %v447_v8  ;;  %481 = vmatpush3.bf16.msra.mxu1 %v447_v8 }
   0xe   :  { %452 = vmatprep.subr.bf16.mxu0 %v451_v13  ;;  %474 = vmatprep.subr.bf16.mxu1 %v451_v13 }
  0x11   :  { %454 = vmatpush3.bf16.msra.mxu0 %v451_v13  ;;  %482 = vmatpush3.bf16.msra.mxu1 %v451_v13 }
  0x12   :  { %456 = vmatprep.subr.bf16.mxu0 %v455_v16  ;;  %475 = vmatprep.subr.bf16.mxu1 %v455_v16 }
  0x15   :  { %458 = vmatpush3.bf16.msra.mxu0 %v455_v16  ;;  %483 = vmatpush3.bf16.msra.mxu1 %v455_v16 }
  0x16   :  { %460 = vmatprep.subr.bf16.mxu0 %v459_v19  ;;  %476 = vmatprep.subr.bf16.mxu1 %v459_v19 }
  0x19   :  { %462 = vmatpush3.bf16.msra.mxu0 %v459_v19  ;;  %484 = vmatpush3.bf16.msra.mxu1 %v459_v19 }
  0x1a   :  { %464 = vmatprep.subr.bf16.mxu0 %v463_v22  ;;  %477 = vmatprep.subr.bf16.mxu1 %v463_v22 }
  0x1d   :  { %466 = vmatpush3.bf16.msra.mxu0 %v463_v22  ;;  %485 = vmatpush3.bf16.msra.mxu1 %v463_v22 }
  0x1e   :  { %468 = vmatprep.subr.bf16.mxu0 %v467_v25  ;;  %478 = vmatprep.subr.bf16.mxu1 %v467_v25 }
  0x21   :  { %470 = vmatpush3.bf16.msra.mxu0 %v467_v25  ;;  %486 = vmatpush3.bf16.msra.mxu1 %v467_v25 }
  0x24   :  { %416 = vmatmul.mubr.f32.vlgmr.msra.gmra.mrb[0].mxu0 %v12_v26  ;;  %428 = vmatmul.mubr.f32.vlgmr.msra.gmra.mrb[0].mxu1 %v20_v27 }
  0x25   :  { %418 = vmatprep.mubr.f32.mxu0 %v13_v28  ;;  %430 = vmatprep.mubr.f32.mxu1 %v21_v29 }
  0x28   :  { %419 = vmatmul.mubr.f32.gmra.mrb[2].mxu0 %v14_v30  ;;  %431 = vmatmul.mubr.f32.gmra.mrb[2].mxu1 %v22_v31 }
  0x29   :  { %421 = vmatprep.mubr.f32.mxu0 %v15_v32  ;;  %433 = vmatprep.mubr.f32.mxu1 %v23_v33 }
  0x2c   :  { %422 = vmatmul.mubr.f32.gmra.mrb[4].mxu0 %v16_v34  ;;  %434 = vmatmul.mubr.f32.gmra.mrb[4].mxu1 %v24_v35 }
  0x2d   :  { %424 = vmatprep.mubr.f32.mxu0 %v17_v36  ;;  %436 = vmatprep.mubr.f32.mxu1 %v25_v37 }
  0x30   :  { %425 = vmatmul.mubr.f32.gmra.mrb[6].mxu0 %v18_v38  ;;  %437 = vmatmul.mubr.f32.gmra.mrb[6].mxu1 %v26_v39 }
  0xf7   :  { %v417_v40 = vpop.f32.mrb[0].mxu0  ;;  %v429_v41 = vpop.f32.mrb[0].mxu1 }
  0xf8   :  { %v109_v42 = vpop.f32.mrb[1].mxu0  ;;  %v149_v43 = vpop.f32.mrb[1].mxu1 }
  0xf9   :  { %v307_v44 = vpack.c.bf16 %v417_v40, %v109_v42  ;;  %v327_v45 = vpack.c.bf16 %v429_v41, %v149_v43 }
  0xfb   :  { %308 = vst [vmem:[%s624_s2] sm:$0xff] %v307_v44   ;;  %347 = vst [vmem:[%s624_s2 + $0x20] sm:$0xff] %v327_v45   ;;  %v420_v46 = vpop.f32.mrb[2].mxu0  ;;  %v432_v47 = vpop.f32.mrb[2].mxu1 }
  0xfc   :  { %v119_v48 = vpop.f32.mrb[3].mxu0  ;;  %v159_v49 = vpop.f32.mrb[3].mxu1 }
  0xfd   :  { %v312_v50 = vpack.c.bf16 %v420_v46, %v119_v48  ;;  %v332_v51 = vpack.c.bf16 %v432_v47, %v159_v49 }
  0xff   :  { %344 = vst [vmem:[%s624_s2 + $0x8] sm:$0xff] %v312_v50   ;;  %348 = vst [vmem:[%s624_s2 + $0x28] sm:$0xff] %v332_v51   ;;  %v423_v52 = vpop.f32.mrb[4].mxu0  ;;  %v435_v53 = vpop.f32.mrb[4].mxu1 }
 0x100   :  { %v129_v54 = vpop.f32.mrb[5].mxu0  ;;  %v169_v55 = vpop.f32.mrb[5].mxu1 }
 0x101   :  { %v317_v56 = vpack.c.bf16 %v423_v52, %v129_v54  ;;  %v337_v57 = vpack.c.bf16 %v435_v53, %v169_v55 }
 0x103   :  { %345 = vst [vmem:[%s624_s2 + $0x10] sm:$0xff] %v317_v56   ;;  %349 = vst [vmem:[%s624_s2 + $0x30] sm:$0xff] %v337_v57   ;;  %v426_v58 = vpop.f32.mrb[6].mxu0  ;;  %v438_v59 = vpop.f32.mrb[6].mxu1 }
 0x104   :  { %v139_v60 = vpop.f32.mrb[7].mxu0  ;;  %v179_v61 = vpop.f32.mrb[7].mxu1 }
 0x105   :  { %v322_v62 = vpack.c.bf16 %v426_v58, %v139_v60  ;;  %v342_v63 = vpack.c.bf16 %v438_v59, %v179_v61 }
 0x107   :  { %346 = vst [vmem:[%s624_s2 + $0x18] sm:$0xff] %v322_v62   ;;  %350 = vst [vmem:[%s624_s2 + $0x38] sm:$0xff] %v342_v63  }

</bundles_post_ra>
